<compile_context>
chip_gen: v6e
topology: v6e:2x2x1
jax: 0.10.0
libtpu: 0.0.40
codegen_flags: <defaults>
</compile_context>

<pallas_src>
import functools

import jax
import jax.numpy as jnp
from jax.experimental import pallas as pl
from jax.experimental.pallas import tpu as pltpu

_H1 = 64   # layer1 out features
_H2 = 32   # layer2 out features


def _mlp_kernel(x_ref, w1_ref, b1_ref, w2_ref, b2_ref, w3_ref, b3_ref, o_ref):
    # Layer 1: Linear(input_dim, 64) + ReLU  (f32 throughout; MXU has huge slack here)
    h1 = jnp.dot(x_ref[...], w1_ref[...], preferred_element_type=jnp.float32)
    h1 = jnp.maximum(h1 + b1_ref[...], 0.0)
    # Dropout(0.2) -> identity at inference.
    # TODO(synk): training-mode dropout (pltpu.prng_random_bits mask) not implemented.
    # Layer 2: Linear(64, 32) + ReLU
    h2 = jnp.dot(h1, w2_ref[...], preferred_element_type=jnp.float32)
    h2 = jnp.maximum(h2 + b2_ref[...], 0.0)
    # Layer 3: Linear(32, num_classes) — store directly at num_classes width (masked vst is cheap).
    out = jnp.dot(h2, w3_ref[...], preferred_element_type=jnp.float32)
    o_ref[...] = (out + b3_ref[...]).astype(o_ref.dtype)


def _round_up(n, m):
    return ((n + m - 1) // m) * m


@functools.partial(jax.jit, static_argnames=("block_b",))
def movie_predictor_forward(x, params, *, block_b=4096):
    """x: [B, input_dim] float32. params: dict of f32 weights/biases.

    Returns [B, num_classes] float32 (MoviePredictor.forward in eval mode).
    """
    B, D = x.shape
    num_classes = params["w3"].shape[1]

    # --- batch tile ---
    # Big enough to amortize the ~0.35 us/grid-step overhead, but:
    #  * >= 2 grid steps when B allows, so v7x's two TensorCores both get work;
    #  * capped so a double-buffered (tb, D) f32 x tile stays ~4 MB (well under scoped VMEM
    #    even on v5e's 16 MiB default);
    #  * multiple of 16 rows, never (much) larger than the batch.
    tb = min(block_b, _round_up(pl.cdiv(B, 2), 16))
    vmem_cap_rows = max(16, ((4 * 1024 * 1024) // (D * 4)) // 16 * 16)
    tb = min(tb, vmem_cap_rows)
    tb = max(8, min(tb, _round_up(B, 8)))
    grid = (pl.cdiv(B, tb),)   # trailing partial block handled (masked) by Pallas

    const = lambda shape: pl.BlockSpec(shape, lambda i: (0, 0))

    flops = 2 * B * (D * _H1 + _H1 * _H2 + _H2 * num_classes)
    bytes_accessed = (
        x.size * 4 + B * num_classes * 4
        + (params["w1"].size + params["w2"].size + params["w3"].size) * 4
        + (params["b1"].size + params["b2"].size + params["b3"].size) * 4
    )

    return pl.pallas_call(
        _mlp_kernel,
        grid=grid,
        in_specs=[
            pl.BlockSpec((tb, D), lambda i: (i, 0)),          # x: batch-tiled, native f32
            const(params["w1"].shape), const(params["b1"].shape),  # weights/biases VMEM-resident
            const(params["w2"].shape), const(params["b2"].shape),
            const(params["w3"].shape), const(params["b3"].shape),
        ],
        out_specs=pl.BlockSpec((tb, num_classes), lambda i: (i, 0)),  # last dim == full array dim
        out_shape=jax.ShapeDtypeStruct((B, num_classes), jnp.float32),
        compiler_params=pltpu.CompilerParams(
            dimension_semantics=("parallel",),
            vmem_limit_bytes=32 * 1024 * 1024,
        ),
        cost_estimate=pl.CostEstimate(
            flops=flops, transcendentals=0, bytes_accessed=bytes_accessed),
    )(x, params["w1"], params["b1"], params["w2"], params["b2"],
      params["w3"], params["b3"])


def init_params(key, input_dim, num_classes):
    """Deterministic PyTorch-style (Kaiming-uniform-ish) init for the 3 Linear layers."""
    ks = jax.random.split(key, 6)

    def linear(kw, kb, fan_in, fan_out):
        bound = 1.0 / jnp.sqrt(fan_in)
        w = jax.random.uniform(kw, (fan_in, fan_out), jnp.float32, -bound, bound)
        b = jax.random.uniform(kb, (1, fan_out), jnp.float32, -bound, bound)
        return w, b

    w1, b1 = linear(ks[0], ks[1], input_dim, _H1)
    w2, b2 = linear(ks[2], ks[3], _H1, _H2)
    w3, b3 = linear(ks[4], ks[5], _H2, num_classes)
    return {"w1": w1, "b1": b1, "w2": w2, "b2": b2, "w3": w3, "b3": b3}


def _reference(x, params):
    """Pure-JAX f32 reference (PyTorch eval-mode forward semantics)."""
    h1 = jnp.maximum(jnp.dot(x, params["w1"]) + params["b1"], 0.0)
    h2 = jnp.maximum(jnp.dot(h1, params["w2"]) + params["b2"], 0.0)
    return jnp.dot(h2, params["w3"]) + params["b3"]


if __name__ == "__main__":
    key = jax.random.PRNGKey(0)
    k_x, k_p = jax.random.split(key)

    B, input_dim, num_classes = 8, 32, 10
    x = jax.random.normal(k_x, (B, input_dim), jnp.float32)
    params = init_params(k_p, input_dim, num_classes)

    out = jax.block_until_ready(movie_predictor_forward(x, params))

    ref = _reference(x, params)
    assert out.shape == (B, num_classes)
    assert jnp.allclose(out, ref, atol=2e-3, rtol=2e-3), (
        float(jnp.max(jnp.abs(out - ref))))

    print("KERNEL_OK")
</pallas_src>

<mosaic_0001>
module attributes {stable_mosaic.version = 11 : i64} {
  func.func @_mlp_kernel(%arg0: i32, %arg1: memref<8x32xf32, #tpu.memory_space<vmem>>, %arg2: memref<32x64xf32, #tpu.memory_space<vmem>>, %arg3: memref<1x64xf32, #tpu.memory_space<vmem>>, %arg4: memref<64x32xf32, #tpu.memory_space<vmem>>, %arg5: memref<1x32xf32, #tpu.memory_space<vmem>>, %arg6: memref<32x10xf32, #tpu.memory_space<vmem>>, %arg7: memref<1x10xf32, #tpu.memory_space<vmem>>, %arg8: memref<8x10xf32, #tpu.memory_space<vmem>>) attributes {dimension_semantics = [#tpu.dimension_semantics<parallel>], iteration_bounds = array<i64: 1>, scalar_prefetch = 0 : i64, scratch_operands = 0 : i64, tpu.core_type = #tpu.core_type<tc>, window_params = [{transform_indices = @transform_0, window_bounds = array<i64: 8, 32>}, {pipeline_mode = #tpu.pipeline_mode<synchronous>, transform_indices = @transform_1, window_bounds = array<i64: 32, 64>}, {pipeline_mode = #tpu.pipeline_mode<synchronous>, transform_indices = @transform_2, window_bounds = array<i64: 1, 64>}, {pipeline_mode = #tpu.pipeline_mode<synchronous>, transform_indices = @transform_3, window_bounds = array<i64: 64, 32>}, {pipeline_mode = #tpu.pipeline_mode<synchronous>, transform_indices = @transform_4, window_bounds = array<i64: 1, 32>}, {pipeline_mode = #tpu.pipeline_mode<synchronous>, transform_indices = @transform_5, window_bounds = array<i64: 32, 10>}, {pipeline_mode = #tpu.pipeline_mode<synchronous>, transform_indices = @transform_6, window_bounds = array<i64: 1, 10>}, {transform_indices = @transform_7, window_bounds = array<i64: 8, 10>}]} {
    %c0 = arith.constant 0 : index
    %c0_0 = arith.constant 0 : index
    %0 = vector.load %arg1[%c0, %c0_0] : memref<8x32xf32, #tpu.memory_space<vmem>>, vector<8x32xf32>
    %c0_1 = arith.constant 0 : index
    %c0_2 = arith.constant 0 : index
    %1 = vector.load %arg2[%c0_1, %c0_2] : memref<32x64xf32, #tpu.memory_space<vmem>>, vector<32x64xf32>
    %cst = arith.constant dense<0.000000e+00> : vector<8x64xf32>
    %2 = tpu.matmul %0, %1, %cst {dimension_numbers = #tpu.dot_dimension_numbers<[1], [0], [0], [1], [0, 0, 1, 1], [], []>} : vector<8x32xf32>, vector<32x64xf32>, vector<8x64xf32> -> vector<8x64xf32>
    %c0_3 = arith.constant 0 : index
    %c0_4 = arith.constant 0 : index
    %3 = vector.load %arg3[%c0_3, %c0_4] : memref<1x64xf32, #tpu.memory_space<vmem>>, vector<1x64xf32>
    %4 = vector.broadcast %3 : vector<1x64xf32> to vector<8x64xf32>
    %5 = arith.addf %2, %4 : vector<8x64xf32>
    %cst_5 = arith.constant 0.000000e+00 : f32
    %6 = vector.broadcast %cst_5 : f32 to vector<8x64xf32>
    %7 = arith.maximumf %5, %6 : vector<8x64xf32>
    %c0_6 = arith.constant 0 : index
    %c0_7 = arith.constant 0 : index
    %8 = vector.load %arg4[%c0_6, %c0_7] : memref<64x32xf32, #tpu.memory_space<vmem>>, vector<64x32xf32>
    %cst_8 = arith.constant dense<0.000000e+00> : vector<8x32xf32>
    %9 = tpu.matmul %7, %8, %cst_8 {dimension_numbers = #tpu.dot_dimension_numbers<[1], [0], [0], [1], [0, 0, 1, 1], [], []>} : vector<8x64xf32>, vector<64x32xf32>, vector<8x32xf32> -> vector<8x32xf32>
    %c0_9 = arith.constant 0 : index
    %c0_10 = arith.constant 0 : index
    %10 = vector.load %arg5[%c0_9, %c0_10] : memref<1x32xf32, #tpu.memory_space<vmem>>, vector<1x32xf32>
    %11 = vector.broadcast %10 : vector<1x32xf32> to vector<8x32xf32>
    %12 = arith.addf %9, %11 : vector<8x32xf32>
    %cst_11 = arith.constant 0.000000e+00 : f32
    %13 = vector.broadcast %cst_11 : f32 to vector<8x32xf32>
    %14 = arith.maximumf %12, %13 : vector<8x32xf32>
    %c0_12 = arith.constant 0 : index
    %c0_13 = arith.constant 0 : index
    %15 = vector.load %arg6[%c0_12, %c0_13] : memref<32x10xf32, #tpu.memory_space<vmem>>, vector<32x10xf32>
    %cst_14 = arith.constant dense<0.000000e+00> : vector<8x10xf32>
    %16 = tpu.matmul %14, %15, %cst_14 {dimension_numbers = #tpu.dot_dimension_numbers<[1], [0], [0], [1], [0, 0, 1, 1], [], []>} : vector<8x32xf32>, vector<32x10xf32>, vector<8x10xf32> -> vector<8x10xf32>
    %c0_15 = arith.constant 0 : index
    %c0_16 = arith.constant 0 : index
    %17 = vector.load %arg7[%c0_15, %c0_16] : memref<1x10xf32, #tpu.memory_space<vmem>>, vector<1x10xf32>
    %18 = vector.broadcast %17 : vector<1x10xf32> to vector<8x10xf32>
    %19 = arith.addf %16, %18 : vector<8x10xf32>
    %c0_17 = arith.constant 0 : index
    %c0_18 = arith.constant 0 : index
    %20 = vector.load %arg8[%c0_17, %c0_18] : memref<8x10xf32, #tpu.memory_space<vmem>>, vector<8x10xf32>
    tpu.vector_store %arg8[%c0_17, %c0_18], %19 {strides = array<i32>} : memref<8x10xf32, #tpu.memory_space<vmem>>, vector<8x10xf32>,
    return
  }
  func.func @transform_0(%arg0: i32) -> (i32, i32) {
    %c0_i32 = arith.constant 0 : i32
    %c0_i32_0 = arith.constant 0 : i32
    return %arg0, %c0_i32 : i32, i32
  }
  func.func @transform_1(%arg0: i32) -> (i32, i32) {
    %c0_i32 = arith.constant 0 : i32
    %c0_i32_0 = arith.constant 0 : i32
    %c0_i32_1 = arith.constant 0 : i32
    return %c0_i32, %c0_i32_0 : i32, i32
  }
  func.func @transform_2(%arg0: i32) -> (i32, i32) {
    %c0_i32 = arith.constant 0 : i32
    %c0_i32_0 = arith.constant 0 : i32
    %c0_i32_1 = arith.constant 0 : i32
    return %c0_i32, %c0_i32_0 : i32, i32
  }
  func.func @transform_3(%arg0: i32) -> (i32, i32) {
    %c0_i32 = arith.constant 0 : i32
    %c0_i32_0 = arith.constant 0 : i32
    %c0_i32_1 = arith.constant 0 : i32
    return %c0_i32, %c0_i32_0 : i32, i32
  }
  func.func @transform_4(%arg0: i32) -> (i32, i32) {
    %c0_i32 = arith.constant 0 : i32
    %c0_i32_0 = arith.constant 0 : i32
    %c0_i32_1 = arith.constant 0 : i32
    return %c0_i32, %c0_i32_0 : i32, i32
  }
  func.func @transform_5(%arg0: i32) -> (i32, i32) {
    %c0_i32 = arith.constant 0 : i32
    %c0_i32_0 = arith.constant 0 : i32
    %c0_i32_1 = arith.constant 0 : i32
    return %c0_i32, %c0_i32_0 : i32, i32
  }
  func.func @transform_6(%arg0: i32) -> (i32, i32) {
    %c0_i32 = arith.constant 0 : i32
    %c0_i32_0 = arith.constant 0 : i32
    %c0_i32_1 = arith.constant 0 : i32
    return %c0_i32, %c0_i32_0 : i32, i32
  }
  func.func @transform_7(%arg0: i32) -> (i32, i32) {
    %c0_i32 = arith.constant 0 : i32
    %c0_i32_0 = arith.constant 0 : i32
    return %arg0, %c0_i32 : i32, i32
  }
}

</mosaic_0001>

<bundles_post_ra>
// kernel: movie_predictor_forward.1
= control target key start
LH: loop header
LB: loop body
LE: loop exit
PB: predicated region body
PF: predicated region fallthrough
CT: control target
= control target key end

     0   :  { %v395_v1 = vmov 0.0   ;;  %vm396_vm0 = vmmov 0   ;;  %s506_s0 = inlined_call_operand.vmem [shape: f32[8,32], index: 0, kind: input, shape index: {}]   ;;  %s507_s1 = inlined_call_operand.vmem [shape: f32[32,64], index: 1, kind: input, shape index: {}]   ;;  %s508_s2 = inlined_call_operand.vmem [shape: f32[1,64], index: 2, kind: input, shape index: {}]   ;;  %s509_s3 = inlined_call_operand.vmem [shape: f32[64,32], index: 3, kind: input, shape index: {}]   ;;  %s510_s4 = inlined_call_operand.vmem [shape: f32[1,32], index: 4, kind: input, shape index: {}]   ;;  %s511_s5 = inlined_call_operand.vmem [shape: f32[32,10], index: 5, kind: input, shape index: {}]   ;;  %s512_s6 = inlined_call_operand.vmem [shape: f32[1,10], index: 6, kind: input, shape index: {}]   ;;  %s513_s7 = inlined_call_operand.hbm [shape: f32[8,10], index: 7, kind: output, shape index: {}]  }
   0x1   :  { %v31_v0 = vld [vmem:[%s507_s1 + $0x18] sm:$0xff]  ;;  %329 = vmatprep.subr.mxu0 %v395_v1  ;;  %v30_v2 = vld [vmem:[%s507_s1 + $0x10] sm:$0xff]  ;;  %337 = vmatprep.mubr.msk.f32.mxu0 %vm396_vm0, %v395_v1  ;;  %v29_v5 = vld [vmem:[%s507_s1 + $0x8] sm:$0xff] }
   0x2   :  { %v121_v3 = vld [vmem:[%s509_s3 + $0x38] sm:$0xff]  ;;  %330 = vmatpush3.msra.mxu0 %v31_v0  ;;  %340 = vmatprep.subr.mxu1 %v395_v1  ;;  %v120_v4 = vld [vmem:[%s509_s3 + $0x30] sm:$0xff] }
   0x3   :  { %331 = vmatprep.subr.mxu0 %v395_v1  ;;  %341 = vmatpush3.msra.mxu1 %v121_v3 }
   0x4   :  { %12 = vsyncpa [#allocation3], 0  ;;  %332 = vmatpush3.msra.mxu0 %v30_v2  ;;  %342 = vmatprep.subr.mxu1 %v395_v1  ;;  %v119_v6 = vld [vmem:[%s509_s3 + $0x28] sm:$0xff]  ;;  %v28_v7 = vld [vmem:[%s507_s1] sm:$0xff]  ;;  %vm39_vm1 = vcmask 261120   ;;  %vm129_vm2 = vcmask 523264  }
   0x5   :  { %333 = vmatprep.subr.mxu0 %v395_v1  ;;  %343 = vmatpush3.msra.mxu1 %v120_v4  ;;  %v27_v8 = vld [vmem:[%s506_s0] sm:$0xff]  ;;  %v117_v10 = vld [vmem:[%s509_s3 + $0x18] sm:$0xff]  ;;  %v116_v11 = vld [vmem:[%s509_s3 + $0x10] sm:$0xff]  ;;  %s397_s14 = smov [#allocation2]   ;;  %vm288_vm3 = vcmask 80896  }
   0x6   :  { %334 = vmatpush3.msra.mxu0 %v29_v5  ;;  %344 = vmatprep.subr.mxu1 %v395_v1  ;;  %v118_v9 = vld [vmem:[%s509_s3 + $0x20] sm:$0xff]  ;;  %v115_v12 = vld [vmem:[%s509_s3 + $0x8] sm:$0xff]  ;;  %v207_v14 = vld [vmem:[%s511_s5 + $0x18] sm:$0xff]  ;;  %s296_s15 = sshll.u32 %s397_s14, 4  ;;  %s297_s15 = int_to_ptr.vmem [resolvable:$true] %s296_s15 }
   0x7   :  { %335 = vmatprep.subr.mxu0 %v395_v1  ;;  %345 = vmatpush3.msra.mxu1 %v119_v6  ;;  %v114_v13 = vld [vmem:[%s509_s3] sm:$0xff]  ;;  %v206_v20 = vld [vmem:[%s511_s5 + $0x10] sm:$0xff]  ;;  %v205_v21 = vld [vmem:[%s511_s5 + $0x8] sm:$0xff]  ;;  %p378_p1 = scmp.lt.s32.totalorder %s297_s15, %s297_s15 }
   0x8   :  { %336 = vmatpush3.msra.mxu0 %v28_v7  ;;  %346 = vmatprep.subr.mxu1 %v395_v1  ;;  %v304_v15 = vld [vmem:[%s508_s2] ss:$0 sm:$0xff] }
   0x9   :  { %338 = vmatmul.mubr.msk.f32.vlgmr.msra.gmra.mxu0 %vm39_vm1, %v27_v8  ;;  %347 = vmatpush3.msra.mxu1 %v118_v9  ;;  %v204_v22 = vld [vmem:[%s511_s5] sm:$0xff]  ;;  %s373_s5 = scalar_lea.vmem %s297_s15, 128 }
   0xa   :  { %348 = vmatprep.subr.mxu1 %v395_v1  ;;  %356 = vmatprep.mubr.msk.f32.mxu1 %vm396_vm0, %v395_v1  ;;  %v306_v23 = vld [vmem:[%s510_s4] ss:$0 sm:$0xff]  ;;  %p374_p0 = scmp.ne.s32.totalorder %s297_s15, %s373_s5  ;;  %p379_p2 = scmp.lt.s32.totalorder %s373_s5, %s373_s5 }
   0xb   :  { %349 = vmatpush3.msra.mxu1 %v117_v10  ;;  %359 = vmatprep.subr.mxu0 %v395_v1  ;;  %v308_v28 = vld [vmem:[%s512_s6] ss:$0 sm:$0xff] }
   0xc   :  { %350 = vmatprep.subr.mxu1 %v395_v1  ;;  %367 = vmatprep.mubr.msk.f32.mxu0 %vm396_vm0, %v395_v1  ;;  %p380_p3 = por %p379_p2, %p378_p1 }
   0xd   :  { %351 = vmatpush3.msra.mxu1 %v116_v11  ;;  %360 = vmatpush3.msra.mxu0 %v207_v14 }
   0xe   :  { %352 = vmatprep.subr.mxu1 %v395_v1  ;;  %361 = vmatprep.subr.mxu0 %v395_v1  ;;  %p381_p4 = pnand %p380_p3, %p374_p0 }
   0xf   :  { %353 = vmatpush3.msra.mxu1 %v115_v12  ;;  %362 = vmatpush3.msra.mxu0 %v206_v20 }
  0x10   :  { %354 = vmatprep.subr.mxu1 %v395_v1  ;;  %363 = vmatprep.subr.mxu0 %v395_v1 }
  0x11   :  { %355 = vmatpush3.msra.mxu1 %v114_v13  ;;  %364 = vmatpush3.msra.mxu0 %v205_v21 }
  0x12   :  { %365 = vmatprep.subr.mxu0 %v395_v1 }
  0x13   :  { %366 = vmatpush3.msra.mxu0 %v204_v22 }
  0xc9   :  { %v109_v16 = vpop.f32.mrf.mxu0 }
  0xca   :  { %v110_v17 = vadd.f32 %v304_v15, %v109_v16 }
  0xcb   :  { %v339_v18 = vpop.f32.mrf.mxu0 }
  0xcc   :  { %v113_v19 = vmax.f32 %v110_v17, 0.0 }
  0xce   :  { %357 = vmatmul.mubr.msk.f32.vlgmr.msra.gmra.mxu1 %vm129_vm2, %v113_v19 }
 0x18e   :  { %v199_v24 = vpop.f32.mrf.mxu1 }
 0x18f   :  { %v200_v25 = vadd.f32 %v306_v23, %v199_v24 }
 0x190   :  { %v358_v26 = vpop.f32.mrf.mxu1 }
 0x191   :  { %v203_v27 = vmax.f32 %v200_v25, 0.0 }
 0x193   :  { %368 = vmatmul.mubr.msk.f32.vlgmr.msra.gmra.mxu0 %vm39_vm1, %v203_v27 }
 0x253   :  { %v284_v29 = vpop.f32.mrf.mxu0 }
 0x254   :  { %v285_v30 = vadd.f32 %v308_v28, %v284_v29 }
 0x255   :  { %v369_v31 = vpop.f32.mrf.mxu0 }
 0x256   :  { %289 = vst.msk [vmem:[#allocation2] sm:$0xff] %vm288_vm3, %v285_v30 }
 0x257   :  { %384 = shalt.err (!%p381_p4)
}
 0x258   :  { %299 = dma.vmem_to_hbm [thread:$0]  %s297_s15, 128, %s513_s7, [#allocation3]  }
 0x259   :  { %393 = dma.done.wait [#allocation3], 128  }
 0x25a   :  { %394 = vsyncadd [#allocation3], 4294967168 }
 0x25b   :  { %303 = vsyncpa [#allocation3], 1 }

</bundles_post_ra>
